<compile_context>
chip_gen: v7x
topology: tpu7x:2x2x1
jax: 0.10.0
libtpu: 0.0.40
codegen_flags: <defaults>
</compile_context>

<pallas_src>
import jax
import jax.numpy as jnp
from jax.experimental import pallas as pl
from jax.experimental.pallas import tpu as pltpu


def _round_up(x: int, m: int) -> int:
    return ((x + m - 1) // m) * m


# --------------------------------------------------------------------------
# Kernels
# --------------------------------------------------------------------------
def lstm_cell_kernel(xh_ref, c_ref, w_ref, b_ref, out_ref):
    """One LSTM cell step on a batch tile.

    xh_ref : [bt, Ip+Hp]  bf16   (x in lanes [0:Ip], h in lanes [Ip:Ip+Hp])
    c_ref  : [bt, Hp]     f32
    w_ref  : [Ip+Hp, 4Hp] bf16   fused gate weight, gate order f,i,c,o
    b_ref  : [1, 4Hp]     f32
    out_ref: [bt, 2Hp]    f32    (h in lanes [0:Hp], c in lanes [Hp:2Hp])
    """
    hp = c_ref.shape[1]
    # Single fused MXU dot, f32 accumulation; z is a lane-dense [bt, 4Hp] slab.
    z = jnp.dot(xh_ref[...], w_ref[...],
                preferred_element_type=jnp.float32) + b_ref[...]

    f_g = jax.nn.sigmoid(z[:, 0 * hp:1 * hp])
    i_g = jax.nn.sigmoid(z[:, 1 * hp:2 * hp])
    g_g = jnp.tanh(z[:, 2 * hp:3 * hp])
    o_g = jax.nn.sigmoid(z[:, 3 * hp:4 * hp])

    c_new = c_ref[...] * f_g + i_g * g_g
    h_new = o_g * jnp.tanh(c_new)

    # Packed, 128-lane-aligned stores.
    out_ref[:, :hp] = h_new
    out_ref[:, hp:] = c_new


def lstm_seq_kernel(xs_ref, h0_ref, c0_ref, w_ref, b_ref, out_ref,
                    xh_buf, c_buf):
    """Whole recurrence in one kernel; grid=(T,), weights VMEM-resident.

    xs_ref : [1, B_pad, Ip] bf16 (current time step)
    h0_ref : [B_pad, Hp]    bf16
    c0_ref : [B_pad, Hp]    f32
    w_ref  : [Ip+Hp, 4Hp]   bf16
    b_ref  : [1, 4Hp]       f32
    out_ref: [B_pad, 2Hp]   f32  (written every step; DMA'd back once at end)
    xh_buf : VMEM [B_pad, Ip+Hp] bf16 scratch (x slab + bf16 shadow of h)
    c_buf  : VMEM [B_pad, Hp]    f32 scratch  (master cell state)
    """
    t = pl.program_id(0)
    hp = c_buf.shape[1]
    ip = xh_buf.shape[1] - hp

    @pl.when(t == 0)
    def _():
        xh_buf[:, ip:] = h0_ref[...]
        c_buf[...] = c0_ref[...]

    xh_buf[:, :ip] = xs_ref[0]

    z = jnp.dot(xh_buf[...], w_ref[...],
                preferred_element_type=jnp.float32) + b_ref[...]

    f_g = jax.nn.sigmoid(z[:, 0 * hp:1 * hp])
    i_g = jax.nn.sigmoid(z[:, 1 * hp:2 * hp])
    g_g = jnp.tanh(z[:, 2 * hp:3 * hp])
    o_g = jax.nn.sigmoid(z[:, 3 * hp:4 * hp])

    c_new = c_buf[...] * f_g + i_g * g_g
    h_new = o_g * jnp.tanh(c_new)

    c_buf[...] = c_new
    xh_buf[:, ip:] = h_new.astype(xh_buf.dtype)   # bf16 shadow for next step

    out_ref[:, :hp] = h_new
    out_ref[:, hp:] = c_new


# --------------------------------------------------------------------------
# Wrappers
# --------------------------------------------------------------------------
def lstm_cell_forward(x, c, h, params):
    """Pallas equivalent of LSTMCell.forward. Returns (h, c, h) like torch."""
    B, input_size = x.shape
    H = h.shape[1]
    Ip = _round_up(input_size, 128)
    Hp = _round_up(H, 128)
    Dp = Ip + Hp
    w_p, b_p = params["w_packed"], params["b_packed"]

    # Batch padding / tiling: bf16 packs 16 rows per vreg; tile batch so the
    # grid axis can be megacore-parallel on v7x for large B.
    if B <= 256:
        B_pad = max(16, _round_up(B, 16))
        bt = B_pad
    else:
        B_pad = _round_up(B, 256)
        bt = 256

    x_p = jnp.zeros((B_pad, Ip), jnp.bfloat16).at[:B, :input_size].set(
        x.astype(jnp.bfloat16))
    h_p = jnp.zeros((B_pad, Hp), jnp.bfloat16).at[:B, :H].set(
        h.astype(jnp.bfloat16))
    xh = jnp.concatenate([x_p, h_p], axis=1)                  # [B_pad, Dp] bf16
    c_p = jnp.zeros((B_pad, Hp), jnp.float32).at[:B, :H].set(c)

    cost = pl.CostEstimate(
        flops=2 * B_pad * Dp * 4 * Hp,
        transcendentals=5 * B_pad * Hp,
        bytes_accessed=(xh.size * 2 + c_p.size * 4 + w_p.size * 2
                        + b_p.size * 4 + B_pad * 2 * Hp * 4),
    )

    out = pl.pallas_call(
        lstm_cell_kernel,
        out_shape=jax.ShapeDtypeStruct((B_pad, 2 * Hp), jnp.float32),
        grid_spec=pltpu.PrefetchScalarGridSpec(
            num_scalar_prefetch=0,
            grid=(B_pad // bt,),
            in_specs=[
                pl.BlockSpec((bt, Dp), lambda i: (i, 0)),
                pl.BlockSpec((bt, Hp), lambda i: (i, 0)),
                pl.BlockSpec((Dp, 4 * Hp), lambda i: (0, 0)),   # resident
                pl.BlockSpec((1, 4 * Hp), lambda i: (0, 0)),    # resident
            ],
            out_specs=pl.BlockSpec((bt, 2 * Hp), lambda i: (i, 0)),
        ),
        compiler_params=pltpu.CompilerParams(
            dimension_semantics=("parallel",),
            vmem_limit_bytes=32 * 1024 * 1024,
        ),
        cost_estimate=cost,
    )(xh, c_p, w_p, b_p)

    h_new = out[:B, :H]
    c_new = out[:B, Hp:Hp + H]
    # torch forward returns (h, c.detach(), h.detach()); detach is a no-op here.
    return h_new, c_new, h_new


def lstm_sequence_forward(xs, c0, h0, params):
    """Run the cell over a whole sequence xs:[T,B,input] in ONE pallas_call.

    Weights stay VMEM-resident across the grid=(T,) recurrence; h/c live in
    VMEM scratch; only the final (h_T, c_T) are written back.
    """
    T, B, input_size = xs.shape
    H = h0.shape[1]
    Ip = _round_up(input_size, 128)
    Hp = _round_up(H, 128)
    Dp = Ip + Hp
    w_p, b_p = params["w_packed"], params["b_packed"]
    B_pad = max(16, _round_up(B, 16))

    xs_p = jnp.zeros((T, B_pad, Ip), jnp.bfloat16).at[:, :B, :input_size].set(
        xs.astype(jnp.bfloat16))
    h0_p = jnp.zeros((B_pad, Hp), jnp.bfloat16).at[:B, :H].set(
        h0.astype(jnp.bfloat16))
    c0_p = jnp.zeros((B_pad, Hp), jnp.float32).at[:B, :H].set(c0)

    cost = pl.CostEstimate(
        flops=2 * T * B_pad * Dp * 4 * Hp,
        transcendentals=5 * T * B_pad * Hp,
        bytes_accessed=(xs_p.size * 2 + h0_p.size * 2 + c0_p.size * 4
                        + w_p.size * 2 + b_p.size * 4 + B_pad * 2 * Hp * 4),
    )

    out = pl.pallas_call(
        lstm_seq_kernel,
        out_shape=jax.ShapeDtypeStruct((B_pad, 2 * Hp), jnp.float32),
        grid_spec=pltpu.PrefetchScalarGridSpec(
            num_scalar_prefetch=0,
            grid=(T,),
            in_specs=[
                pl.BlockSpec((1, B_pad, Ip), lambda t: (t, 0, 0)),
                pl.BlockSpec((B_pad, Hp), lambda t: (0, 0)),
                pl.BlockSpec((B_pad, Hp), lambda t: (0, 0)),
                pl.BlockSpec((Dp, 4 * Hp), lambda t: (0, 0)),   # resident
                pl.BlockSpec((1, 4 * Hp), lambda t: (0, 0)),    # resident
            ],
            out_specs=pl.BlockSpec((B_pad, 2 * Hp), lambda t: (0, 0)),
            scratch_shapes=[
                pltpu.VMEM((B_pad, Dp), jnp.bfloat16),   # x slab + bf16 h shadow
                pltpu.VMEM((B_pad, Hp), jnp.float32),    # f32 master cell state
            ],
        ),
        compiler_params=pltpu.CompilerParams(
            dimension_semantics=("arbitrary",),           # recurrence over time
            vmem_limit_bytes=32 * 1024 * 1024,
        ),
        cost_estimate=cost,
    )(xs_p, h0_p, c0_p, w_p, b_p)

    # TODO(synk): for production H >= 1024 on v7x (64 MiB VMEM), tile the 4H
    # axis with an extra grid dimension so only a [Dp, N_tile] weight slab is
    # resident per step.
    h_T = out[:B, :H]
    c_T = out[:B, Hp:Hp + H]
    return h_T, c_T


# --------------------------------------------------------------------------
# Parameters
# --------------------------------------------------------------------------
def _pack_params(w, b, input_size, hidden_size):
    """Pack fused [D,4H] weight into the lane-padded kernel layout.

    Rows: x rows at [0:input_size], h rows at [Ip:Ip+hidden]; per-gate column
    blocks padded to 128 lanes. Padding rows/cols are zero, so padded lanes
    never contaminate real outputs.
    """
    H = hidden_size
    Ip = _round_up(input_size, 128)
    Hp = _round_up(H, 128)
    w_p = jnp.zeros((Ip + Hp, 4 * Hp), jnp.float32)
    b_p = jnp.zeros((1, 4 * Hp), jnp.float32)
    for g in range(4):
        wg = w[:, g * H:(g + 1) * H]
        w_p = w_p.at[:input_size, g * Hp:g * Hp + H].set(wg[:input_size])
        w_p = w_p.at[Ip:Ip + H, g * Hp:g * Hp + H].set(wg[input_size:])
        b_p = b_p.at[:, g * Hp:g * Hp + H].set(b[:, g * H:(g + 1) * H])
    return w_p.astype(jnp.bfloat16), b_p


def init_params(key, input_size, hidden_size):
    """nn.Linear(input+hidden, hidden) x4 (gate order f,i,c,o), fused."""
    D = input_size + hidden_size
    bound = 1.0 / (D ** 0.5)                     # PyTorch Linear default init
    ws, bs = [], []
    for _ in range(4):                           # f, i, c, o
        key, kw, kb = jax.random.split(key, 3)
        ws.append(jax.random.uniform(kw, (D, hidden_size), jnp.float32,
                                     -bound, bound))
        bs.append(jax.random.uniform(kb, (1, hidden_size), jnp.float32,
                                     -bound, bound))
    w = jnp.concatenate(ws, axis=1)              # [D, 4H]
    b = jnp.concatenate(bs, axis=1)              # [1, 4H]
    w_packed, b_packed = _pack_params(w, b, input_size, hidden_size)
    return {"w": w, "b": b, "w_packed": w_packed, "b_packed": b_packed}


# --------------------------------------------------------------------------
# Demo / correctness check
# --------------------------------------------------------------------------
if __name__ == "__main__":
    input_size, hidden_size, batch, seq_len = 16, 32, 2, 8

    key = jax.random.PRNGKey(0)
    key, kx, kc, kh, kp, ks = jax.random.split(key, 6)

    x = jax.random.normal(kx, (batch, input_size), jnp.float32)
    c = jax.random.normal(kc, (batch, hidden_size), jnp.float32)
    h = jax.random.normal(kh, (batch, hidden_size), jnp.float32)
    params = init_params(kp, input_size, hidden_size)

    # --- single step (module forward semantics) ---
    h_out, c_out, h_out2 = lstm_cell_forward(x, c, h, params)
    jax.block_until_ready((h_out, c_out, h_out2))

    # Pure-JAX reference with the same bf16 quantization of weights/activations.
    def ref_step(x_, c_, h_):
        H = hidden_size
        w_q = params["w"].astype(jnp.bfloat16).astype(jnp.float32)
        x_q = x_.astype(jnp.bfloat16).astype(jnp.float32)
        h_q = h_.astype(jnp.bfloat16).astype(jnp.float32)
        z = jnp.concatenate([x_q, h_q], axis=1) @ w_q + params["b"]
        f_g = jax.nn.sigmoid(z[:, 0 * H:1 * H])
        i_g = jax.nn.sigmoid(z[:, 1 * H:2 * H])
        g_g = jnp.tanh(z[:, 2 * H:3 * H])
        o_g = jax.nn.sigmoid(z[:, 3 * H:4 * H])
        c_n = c_ * f_g + i_g * g_g
        h_n = o_g * jnp.tanh(c_n)
        return h_n, c_n

    h_ref, c_ref = ref_step(x, c, h)
    assert jnp.allclose(h_out, h_ref, atol=2e-2), "hidden state mismatch"
    assert jnp.allclose(c_out, c_ref, atol=2e-2), "cell state mismatch"

    # --- whole recurrence fused in one kernel (grid=(T,)) ---
    xs = jax.random.normal(ks, (seq_len, batch, input_size), jnp.float32)
    h_T, c_T = lstm_sequence_forward(xs, c, h, params)
    jax.block_until_ready((h_T, c_T))

    h_rr, c_rr = h, c
    for t in range(seq_len):
        h_rr, c_rr = ref_step(xs[t], c_rr, h_rr)
    assert jnp.allclose(h_T, h_rr, atol=5e-2), "sequence hidden mismatch"
    assert jnp.allclose(c_T, c_rr, atol=5e-2), "sequence cell mismatch"

    print("KERNEL_OK")
</pallas_src>

<mosaic_0001>
module attributes {stable_mosaic.version = 11 : i64} {
  func.func @lstm_cell_kernel(%arg0: i32, %arg1: memref<16x256xbf16, #tpu.memory_space<vmem>>, %arg2: memref<16x128xf32, #tpu.memory_space<vmem>>, %arg3: memref<256x512xbf16, #tpu.memory_space<vmem>>, %arg4: memref<1x512xf32, #tpu.memory_space<vmem>>, %arg5: memref<16x256xf32, #tpu.memory_space<vmem>>) attributes {dimension_semantics = [#tpu.dimension_semantics<parallel>], iteration_bounds = array<i64: 1>, scalar_prefetch = 0 : i64, scratch_operands = 0 : i64, tpu.core_type = #tpu.core_type<tc>, window_params = [{transform_indices = @transform_0, window_bounds = array<i64: 16, 256>}, {transform_indices = @transform_1, window_bounds = array<i64: 16, 128>}, {pipeline_mode = #tpu.pipeline_mode<synchronous>, transform_indices = @transform_2, window_bounds = array<i64: 256, 512>}, {pipeline_mode = #tpu.pipeline_mode<synchronous>, transform_indices = @transform_3, window_bounds = array<i64: 1, 512>}, {transform_indices = @transform_4, window_bounds = array<i64: 16, 256>}]} {
    %c0 = arith.constant 0 : index
    %c0_0 = arith.constant 0 : index
    %0 = vector.load %arg1[%c0, %c0_0] : memref<16x256xbf16, #tpu.memory_space<vmem>>, vector<16x256xbf16>
    %c0_1 = arith.constant 0 : index
    %c0_2 = arith.constant 0 : index
    %1 = vector.load %arg3[%c0_1, %c0_2] : memref<256x512xbf16, #tpu.memory_space<vmem>>, vector<256x512xbf16>
    %cst = arith.constant dense<0.000000e+00> : vector<16x512xf32>
    %2 = tpu.matmul %0, %1, %cst {dimension_numbers = #tpu.dot_dimension_numbers<[1], [0], [0], [1], [0, 0, 1, 1], [], []>} : vector<16x256xbf16>, vector<256x512xbf16>, vector<16x512xf32> -> vector<16x512xf32>
    %c0_3 = arith.constant 0 : index
    %c0_4 = arith.constant 0 : index
    %3 = vector.load %arg4[%c0_3, %c0_4] : memref<1x512xf32, #tpu.memory_space<vmem>>, vector<1x512xf32>
    %4 = vector.broadcast %3 : vector<1x512xf32> to vector<16x512xf32>
    %5 = arith.addf %2, %4 : vector<16x512xf32>
    %6 = vector.extract_strided_slice %5 {offsets = [0, 0], sizes = [16, 128], strides = [1, 1]} : vector<16x512xf32> to vector<16x128xf32>
    %7 = arith.negf %6 : vector<16x128xf32>
    %8 = math.exp %7 : vector<16x128xf32>
    %cst_5 = arith.constant 1.000000e+00 : f32
    %9 = vector.broadcast %cst_5 : f32 to vector<16x128xf32>
    %10 = arith.addf %9, %8 : vector<16x128xf32>
    %11 = arith.divf %9, %10 : vector<16x128xf32>
    %12 = vector.extract_strided_slice %5 {offsets = [0, 128], sizes = [16, 128], strides = [1, 1]} : vector<16x512xf32> to vector<16x128xf32>
    %13 = arith.negf %12 : vector<16x128xf32>
    %14 = math.exp %13 : vector<16x128xf32>
    %cst_6 = arith.constant 1.000000e+00 : f32
    %15 = vector.broadcast %cst_6 : f32 to vector<16x128xf32>
    %16 = arith.addf %15, %14 : vector<16x128xf32>
    %17 = arith.divf %15, %16 : vector<16x128xf32>
    %18 = vector.extract_strided_slice %5 {offsets = [0, 256], sizes = [16, 128], strides = [1, 1]} : vector<16x512xf32> to vector<16x128xf32>
    %19 = math.tanh %18 : vector<16x128xf32>
    %20 = vector.extract_strided_slice %5 {offsets = [0, 384], sizes = [16, 128], strides = [1, 1]} : vector<16x512xf32> to vector<16x128xf32>
    %21 = arith.negf %20 : vector<16x128xf32>
    %22 = math.exp %21 : vector<16x128xf32>
    %cst_7 = arith.constant 1.000000e+00 : f32
    %23 = vector.broadcast %cst_7 : f32 to vector<16x128xf32>
    %24 = arith.addf %23, %22 : vector<16x128xf32>
    %25 = arith.divf %23, %24 : vector<16x128xf32>
    %c0_8 = arith.constant 0 : index
    %c0_9 = arith.constant 0 : index
    %26 = vector.load %arg2[%c0_8, %c0_9] : memref<16x128xf32, #tpu.memory_space<vmem>>, vector<16x128xf32>
    %27 = arith.mulf %26, %11 : vector<16x128xf32>
    %28 = arith.mulf %17, %19 : vector<16x128xf32>
    %29 = arith.addf %27, %28 : vector<16x128xf32>
    %30 = math.tanh %29 : vector<16x128xf32>
    %31 = arith.mulf %25, %30 : vector<16x128xf32>
    %c0_10 = arith.constant 0 : index
    %c0_11 = arith.constant 0 : index
    %32 = vector.load %arg5[%c0_10, %c0_11] : memref<16x256xf32, #tpu.memory_space<vmem>>, vector<16x128xf32>
    tpu.vector_store %arg5[%c0_10, %c0_11], %31 {strides = array<i32>} : memref<16x256xf32, #tpu.memory_space<vmem>>, vector<16x128xf32>,
    %c0_12 = arith.constant 0 : index
    %c128 = arith.constant 128 : index
    %33 = vector.load %arg5[%c0_12, %c128] : memref<16x256xf32, #tpu.memory_space<vmem>>, vector<16x128xf32>
    tpu.vector_store %arg5[%c0_12, %c128], %29 {strides = array<i32>} : memref<16x256xf32, #tpu.memory_space<vmem>>, vector<16x128xf32>,
    return
  }
  func.func @transform_0(%arg0: i32) -> (i32, i32) {
    %c0_i32 = arith.constant 0 : i32
    %c0_i32_0 = arith.constant 0 : i32
    return %arg0, %c0_i32 : i32, i32
  }
  func.func @transform_1(%arg0: i32) -> (i32, i32) {
    %c0_i32 = arith.constant 0 : i32
    %c0_i32_0 = arith.constant 0 : i32
    return %arg0, %c0_i32 : i32, i32
  }
  func.func @transform_2(%arg0: i32) -> (i32, i32) {
    %c0_i32 = arith.constant 0 : i32
    %c0_i32_0 = arith.constant 0 : i32
    %c0_i32_1 = arith.constant 0 : i32
    return %c0_i32, %c0_i32_0 : i32, i32
  }
  func.func @transform_3(%arg0: i32) -> (i32, i32) {
    %c0_i32 = arith.constant 0 : i32
    %c0_i32_0 = arith.constant 0 : i32
    %c0_i32_1 = arith.constant 0 : i32
    return %c0_i32, %c0_i32_0 : i32, i32
  }
  func.func @transform_4(%arg0: i32) -> (i32, i32) {
    %c0_i32 = arith.constant 0 : i32
    %c0_i32_0 = arith.constant 0 : i32
    return %arg0, %c0_i32 : i32, i32
  }
}

</mosaic_0001>

<bundles_post_ra>
// kernel: tpu_custom_call.1
= control target key start
LH: loop header
LB: loop body
LE: loop exit
PB: predicated region body
PF: predicated region fallthrough
CT: control target
= control target key end

     0   :  { %9 = vsyncpa [#allocation3], 0  ;;  %s1037_s0 = inlined_call_operand.hbm [shape: bf16[16,256], index: 0, kind: input, shape index: {}]   ;;  %s1038_s1 = inlined_call_operand.hbm [shape: f32[16,128], index: 1, kind: input, shape index: {}]   ;;  %s1039_s2 = inlined_call_operand.hbm [shape: bf16[256,512], index: 2, kind: input, shape index: {}]   ;;  %s1040_s3 = inlined_call_operand.vmem [shape: f32[1,512], index: 3, kind: input, shape index: {}]   ;;  %s1041_s4 = inlined_call_operand.hbm [shape: f32[16,256], index: 4, kind: output, shape index: {}]  }
   0x1   :  { %10 = vsyncpa [#allocation6], 0 }
   0x2   :  { %11 = vsyncpa [#allocation4], 0  ;;  %s940_s15 = smov [#allocation5]   ;;  %s941_s17 = smov [#allocation2]  }
   0x3   :  { %s29_s16 = sshll.u32 %s940_s15, 4  ;;  %s17_s18 = sshll.u32 %s941_s17, 4  ;;  %s30_s16 = int_to_ptr.vmem [resolvable:$true] %s29_s16  ;;  %s973_s18 = int_to_ptr.vmem [resolvable:$true] %s17_s18 }
   0x4   :  { %s846_s21 = scalar_lea.hbm %s1038_s1, 256 }
   0x5   :  { %p847_p0 = scmp.ne.s32.totalorder %s1038_s1, %s846_s21  ;;  %p850_p1 = scmp.lt.u32.totalorder %s846_s21, %s1038_s1 }
   0x7   :  { %p852_p2 = pnand %p850_p1, %p847_p0 }
   0x9   :  { %855 = shalt.err (!%p852_p2)
}
   0xa   :  { %s856_s26 = scalar_lea.vmem %s30_s16, 256  ;;  %p861_p4 = scmp.lt.s32.totalorder %s30_s16, %s30_s16 }
   0xb   :  { %p857_p3 = scmp.ne.s32.totalorder %s30_s16, %s856_s26  ;;  %p862_p5 = scmp.lt.s32.totalorder %s856_s26, %s856_s26 }
   0xd   :  { %p863_p6 = por %p862_p5, %p861_p4 }
   0xf   :  { %p864_p7 = pnand %p863_p6, %p857_p3 }
  0x11   :  { %867 = shalt.err (!%p864_p7)
}
  0x12   :  { %s942_s27 = smov 128   ;;  %s943_s28 = smov 8  }
  0x13   :  { %35 = dma.hbm_to_vmem [thread:$0]  %s1038_s1, 256, %s30_s16, [#allocation6], %s942_s27, %s942_s27, %s943_s28  }
  0x14   :  { %s868_s7 = scalar_lea.hbm %s1037_s0, 256 }
  0x15   :  { %p869_p8 = scmp.ne.s32.totalorder %s1037_s0, %s868_s7  ;;  %p872_p9 = scmp.lt.u32.totalorder %s868_s7, %s1037_s0 }
  0x17   :  { %p874_p10 = pnand %p872_p9, %p869_p8 }
  0x19   :  { %877 = shalt.err (!%p874_p10)
}
  0x1a   :  { %s878_s12 = scalar_lea.vmem %s973_s18, 256  ;;  %p883_p12 = scmp.lt.s32.totalorder %s973_s18, %s973_s18 }
  0x1b   :  { %p879_p11 = scmp.ne.s32.totalorder %s973_s18, %s878_s12  ;;  %p884_p13 = scmp.lt.s32.totalorder %s878_s12, %s878_s12 }
  0x1d   :  { %p885_p0 = por %p884_p13, %p883_p12 }
  0x1f   :  { %p886_p1 = pnand %p885_p0, %p879_p11 }
  0x21   :  { %889 = shalt.err (!%p886_p1)
}
  0x22   :  { %23 = dma.hbm_to_vmem [thread:$0]  %s1037_s0, 256, %s973_s18, [#allocation3], %s942_s27, %s942_s27, %s943_s28  }
  0x23   :  { %s944_s14 = smov [#allocation7]   ;;  %s890_s19 = scalar_lea.hbm %s1039_s2, 8192 }
  0x24   :  { %s41_s15 = sshll.u32 %s944_s14, 4  ;;  %p891_p2 = scmp.ne.s32.totalorder %s1039_s2, %s890_s19  ;;  %s42_s15 = int_to_ptr.vmem [resolvable:$true] %s41_s15 }
  0x25   :  { %p894_p3 = scmp.lt.u32.totalorder %s890_s19, %s1039_s2 }
  0x27   :  { %p896_p4 = pnand %p894_p3, %p891_p2 }
  0x29   :  { %899 = shalt.err (!%p896_p4)
}
  0x2a   :  { %s900_s24 = scalar_lea.vmem %s42_s15, 8192  ;;  %p905_p6 = scmp.lt.s32.totalorder %s42_s15, %s42_s15 }
  0x2b   :  { %p901_p5 = scmp.ne.s32.totalorder %s42_s15, %s900_s24  ;;  %p906_p7 = scmp.lt.s32.totalorder %s900_s24, %s900_s24 }
  0x2d   :  { %p907_p8 = por %p906_p7, %p905_p6 }
  0x2f   :  { %p908_p9 = pnand %p907_p8, %p901_p5 }
  0x31   :  { %911 = shalt.err (!%p908_p9)
}
  0x32   :  { %s945_s0 = smov 256   ;;  %s946_s18 = smov 16  }
  0x33   :  { %47 = dma.hbm_to_vmem [thread:$0]  %s1039_s2, 8192, %s42_s15, [#allocation6], %s945_s0, %s945_s0, %s946_s18  }
  0x34   :  { %934 = dma.done.wait [#allocation3], 256  }
  0x35   :  { %935 = vsyncadd [#allocation3], 4294967040 }
  0x36   :  { %936 = dma.done.wait [#allocation6], 8448  }
  0x37   :  { %937 = vsyncadd [#allocation6], 4294958848  ;;  %v715_v0 = vld [vmem:[#allocation7 + $0x4] ss:$16 sps:$4 sm:$0xff]   ;;  %v717_v1 = vld [vmem:[#allocation7] ss:$16 sps:$4 sm:$0xff]  }
  0x38   :  { %477 = vmatprep.subr.bf16.mxu0 %v715_v0  ;;  %v718_v2 = vld [vmem:[#allocation7 + $0x24] ss:$16 sps:$4 sm:$0xff]   ;;  %v720_v3 = vld [vmem:[#allocation7 + $0x20] ss:$16 sps:$4 sm:$0xff]   ;;  %v726_v5 = vld [vmem:[#allocation7 + $0xc] ss:$16 sps:$4 sm:$0xff]  }
  0x39   :  { %478 = vmatpush1.bf16.msra.mxu0 %v717_v1  ;;  %v721_v4 = vld [vmem:[#allocation7 + $0x44] ss:$16 sps:$4 sm:$0xff]   ;;  %v729_v6 = vld [vmem:[#allocation7 + $0x8] ss:$16 sps:$4 sm:$0xff]   ;;  %v723_v7 = vld [vmem:[#allocation7 + $0x40] ss:$16 sps:$4 sm:$0xff]   ;;  %520 = vmatprep.subr.bf16.mxu1 %v726_v5 }
  0x3a   :  { %479 = vmatprep.subr.bf16.mxu0 %v718_v2  ;;  %v724_v8 = vld [vmem:[#allocation7 + $0x64] ss:$16 sps:$4 sm:$0xff]   ;;  %521 = vmatpush1.bf16.msra.mxu1 %v729_v6  ;;  %v732_v9 = vld [vmem:[#allocation7 + $0x2c] ss:$16 sps:$4 sm:$0xff]   ;;  %v735_v10 = vld [vmem:[#allocation7 + $0x28] ss:$16 sps:$4 sm:$0xff]   ;;  %v127_v2 = vlaneseq }
  0x3b   :  { %522 = vmatprep.subr.bf16.mxu1 %v732_v9  ;;  %v728_v11 = vld [vmem:[#allocation7 + $0x60] ss:$16 sps:$4 sm:$0xff]   ;;  %v730_v12 = vld [vmem:[#allocation7 + $0x84] ss:$16 sps:$4 sm:$0xff]   ;;  %v738_v13 = vld [vmem:[#allocation7 + $0x4c] ss:$16 sps:$4 sm:$0xff]  }
  0x3c   :  { %v741_v14 = vld [vmem:[#allocation7 + $0x48] ss:$16 sps:$4 sm:$0xff]   ;;  %v744_v15 = vld [vmem:[#allocation7 + $0x6c] ss:$16 sps:$4 sm:$0xff]   ;;  %v734_v16 = vld [vmem:[#allocation7 + $0x80] ss:$16 sps:$4 sm:$0xff]  }
  0x3d   :  { %480 = vmatpush1.bf16.msra.mxu0 %v720_v3  ;;  %v736_v17 = vld [vmem:[#allocation7 + $0xa4] ss:$16 sps:$4 sm:$0xff]   ;;  %v747_v18 = vld [vmem:[#allocation7 + $0x68] ss:$16 sps:$4 sm:$0xff]   ;;  %v750_v19 = vld [vmem:[#allocation7 + $0x8c] ss:$16 sps:$4 sm:$0xff]  }
  0x3e   :  { %481 = vmatprep.subr.bf16.mxu0 %v721_v4  ;;  %523 = vmatpush1.bf16.msra.mxu1 %v735_v10  ;;  %v740_v20 = vld [vmem:[#allocation7 + $0xa0] ss:$16 sps:$4 sm:$0xff]   ;;  %v742_v21 = vld [vmem:[#allocation7 + $0xc4] ss:$16 sps:$4 sm:$0xff]   ;;  %v753_v22 = vld [vmem:[#allocation7 + $0x88] ss:$16 sps:$4 sm:$0xff]  }
  0x3f   :  { %524 = vmatprep.subr.bf16.mxu1 %v738_v13  ;;  %v756_v23 = vld [vmem:[#allocation7 + $0xac] ss:$16 sps:$4 sm:$0xff]   ;;  %v746_v24 = vld [vmem:[#allocation7 + $0xc0] ss:$16 sps:$4 sm:$0xff]   ;;  %v748_v25 = vld [vmem:[#allocation7 + $0xe4] ss:$16 sps:$4 sm:$0xff]  }
  0x40   :  { %v759_v26 = vld [vmem:[#allocation7 + $0xa8] ss:$16 sps:$4 sm:$0xff]   ;;  %v762_v27 = vld [vmem:[#allocation7 + $0xcc] ss:$16 sps:$4 sm:$0xff]   ;;  %v752_v28 = vld [vmem:[#allocation7 + $0xe0] ss:$16 sps:$4 sm:$0xff]  }
  0x41   :  { %482 = vmatpush1.bf16.msra.mxu0 %v723_v7  ;;  %v754_v29 = vld [vmem:[#allocation7 + $0x104] ss:$16 sps:$4 sm:$0xff]   ;;  %v765_v30 = vld [vmem:[#allocation7 + $0xc8] ss:$16 sps:$4 sm:$0xff]   ;;  %v768_v31 = vld [vmem:[#allocation7 + $0xec] ss:$16 sps:$4 sm:$0xff]  }
  0x42   :  { %483 = vmatprep.subr.bf16.mxu0 %v724_v8  ;;  %525 = vmatpush1.bf16.msra.mxu1 %v741_v14  ;;  %v758_v32 = vld [vmem:[#allocation7 + $0x100] ss:$16 sps:$4 sm:$0xff]   ;;  %v760_v33 = vld [vmem:[#allocation7 + $0x124] ss:$16 sps:$4 sm:$0xff]   ;;  %v771_v34 = vld [vmem:[#allocation7 + $0xe8] ss:$16 sps:$4 sm:$0xff]  }
  0x43   :  { %526 = vmatprep.subr.bf16.mxu1 %v744_v15  ;;  %v774_v35 = vld [vmem:[#allocation7 + $0x10c] ss:$16 sps:$4 sm:$0xff]   ;;  %v764_v36 = vld [vmem:[#allocation7 + $0x120] ss:$16 sps:$4 sm:$0xff]   ;;  %v766_v37 = vld [vmem:[#allocation7 + $0x144] ss:$16 sps:$4 sm:$0xff]  }
  0x44   :  { %v777_v38 = vld [vmem:[#allocation7 + $0x108] ss:$16 sps:$4 sm:$0xff]   ;;  %v780_v39 = vld [vmem:[#allocation7 + $0x12c] ss:$16 sps:$4 sm:$0xff]   ;;  %v770_v40 = vld [vmem:[#allocation7 + $0x140] ss:$16 sps:$4 sm:$0xff]  }
  0x45   :  { %484 = vmatpush1.bf16.msra.mxu0 %v728_v11  ;;  %v772_v41 = vld [vmem:[#allocation7 + $0x164] ss:$16 sps:$4 sm:$0xff]   ;;  %v783_v43 = vld [vmem:[#allocation7 + $0x128] ss:$16 sps:$4 sm:$0xff]   ;;  %v786_v44 = vld [vmem:[#allocation7 + $0x14c] ss:$16 sps:$4 sm:$0xff]  }
  0x46   :  { %485 = vmatprep.subr.bf16.mxu0 %v730_v12  ;;  %527 = vmatpush1.bf16.msra.mxu1 %v747_v18  ;;  %v804_v42 = vld [vmem:[#allocation2 + $0x4] ss:$8 sps:$4 sm:$0xff]   ;;  %v776_v45 = vld [vmem:[#allocation7 + $0x160] ss:$16 sps:$4 sm:$0xff]   ;;  %v789_v47 = vld [vmem:[#allocation7 + $0x148] ss:$16 sps:$4 sm:$0xff]  }
  0x47   :  { %528 = vmatprep.subr.bf16.mxu1 %v750_v19  ;;  %509 = vmatprep.mubr.bf16.mxu0 %v804_v42  ;;  %v778_v46 = vld [vmem:[#allocation7 + $0x184] ss:$16 sps:$4 sm:$0xff]   ;;  %v792_v48 = vld [vmem:[#allocation7 + $0x16c] ss:$16 sps:$4 sm:$0xff]   ;;  %v782_v49 = vld [vmem:[#allocation7 + $0x180] ss:$16 sps:$4 sm:$0xff]  }
  0x48   :  { %552 = vmatprep.mubr.bf16.mxu1 %v804_v42  ;;  %v784_v50 = vld [vmem:[#allocation7 + $0x1a4] ss:$16 sps:$4 sm:$0xff]   ;;  %v795_v51 = vld [vmem:[#allocation7 + $0x168] ss:$16 sps:$4 sm:$0xff]   ;;  %v798_v52 = vld [vmem:[#allocation7 + $0x18c] ss:$16 sps:$4 sm:$0xff]  }
  0x49   :  { %486 = vmatpush1.bf16.msra.mxu0 %v734_v16  ;;  %v788_v53 = vld [vmem:[#allocation7 + $0x1a0] ss:$16 sps:$4 sm:$0xff]   ;;  %v790_v54 = vld [vmem:[#allocation7 + $0x1c4] ss:$16 sps:$4 sm:$0xff]   ;;  %v801_v55 = vld [vmem:[#allocation7 + $0x188] ss:$16 sps:$4 sm:$0xff]  }
  0x4a   :  { %487 = vmatprep.subr.bf16.mxu0 %v736_v17  ;;  %529 = vmatpush1.bf16.msra.mxu1 %v753_v22  ;;  %v805_v56 = vld [vmem:[#allocation7 + $0x1ac] ss:$16 sps:$4 sm:$0xff]   ;;  %v794_v57 = vld [vmem:[#allocation7 + $0x1c0] ss:$16 sps:$4 sm:$0xff]   ;;  %v796_v58 = vld [vmem:[#allocation7 + $0x1e4] ss:$16 sps:$4 sm:$0xff]  }
  0x4b   :  { %530 = vmatprep.subr.bf16.mxu1 %v756_v23  ;;  %v807_v59 = vld [vmem:[#allocation7 + $0x1a8] ss:$16 sps:$4 sm:$0xff]   ;;  %v808_v60 = vld [vmem:[#allocation7 + $0x1cc] ss:$16 sps:$4 sm:$0xff]   ;;  %v800_v61 = vld [vmem:[#allocation7 + $0x1e0] ss:$16 sps:$4 sm:$0xff]  }
  0x4c   :  { %v810_v62 = vld [vmem:[#allocation7 + $0x1c8] ss:$16 sps:$4 sm:$0xff]   ;;  %v811_v63 = vld [vmem:[#allocation7 + $0x1ec] ss:$16 sps:$4 sm:$0xff]   ;;  %v128_v3 = vshrl.u32 %v127_v2, 7 }
  0x4d   :  { %488 = vmatpush1.bf16.msra.mxu0 %v740_v20  ;;  %v802_v0 = vld [vmem:[#allocation2] ss:$8 sps:$4 sm:$0xff]  }
  0x4e   :  { %489 = vmatprep.subr.bf16.mxu0 %v742_v21  ;;  %531 = vmatpush1.bf16.msra.mxu1 %v759_v26  ;;  %v813_v1 = vld [vmem:[#allocation7 + $0x1e8] ss:$16 sps:$4 sm:$0xff]   ;;  %v129_v4 = vsub.s32 0, %v128_v3  ;;  %v125_v5 = vld [vmem:[%s1040_s3] sm:$0xf]  ;;  %v133_v6 = vsub.s32 1, %v128_v3 }
  0x4f   :  { %532 = vmatprep.subr.bf16.mxu1 %v762_v27  ;;  %v141_v9 = vsub.s32 3, %v128_v3  ;;  %v137_v15 = vsub.s32 2, %v128_v3  ;;  %s947_s3 = smov [#allocation8]  }
  0x50   :  { %v130_v7 = vrot.slane %v125_v5, %v129_v4  ;;  %v134_v8 = vrot.slane %v125_v5, %v133_v6  ;;  %s622_s28 = sshll.u32 %s947_s3, 4  ;;  %s623_s28 = int_to_ptr.vmem [resolvable:$true] %s622_s28 }
  0x51   :  { %490 = vmatpush1.bf16.msra.mxu0 %v746_v24  ;;  %v142_v19 = vrot.slane %v125_v5, %v141_v9  ;;  %s912_s29 = scalar_lea.vmem %s623_s28, 512  ;;  %p917_p11 = scmp.lt.s32.totalorder %s623_s28, %s623_s28 }
  0x52   :  { %491 = vmatprep.subr.bf16.mxu0 %v748_v25  ;;  %533 = vmatpush1.bf16.msra.mxu1 %v765_v30  ;;  %v138_v25 = vrot.slane %v125_v5, %v137_v15  ;;  %p913_p10 = scmp.ne.s32.totalorder %s623_s28, %s912_s29  ;;  %p918_p12 = scmp.lt.s32.totalorder %s912_s29, %s912_s29 }
  0x53   :  { %534 = vmatprep.subr.bf16.mxu1 %v768_v31 }
  0x54   :  { %p919_p13 = por %p918_p12, %p917_p11 }
  0x55   :  { %492 = vmatpush1.bf16.msra.mxu0 %v752_v28 }
  0x56   :  { %493 = vmatprep.subr.bf16.mxu0 %v754_v29  ;;  %535 = vmatpush1.bf16.msra.mxu1 %v771_v34  ;;  %p920_p0 = pnand %p919_p13, %p913_p10 }
  0x57   :  { %536 = vmatprep.subr.bf16.mxu1 %v774_v35 }
  0x59   :  { %494 = vmatpush1.bf16.msra.mxu0 %v758_v32 }
  0x5a   :  { %495 = vmatprep.subr.bf16.mxu0 %v760_v33  ;;  %537 = vmatpush1.bf16.msra.mxu1 %v777_v38 }
  0x5b   :  { %538 = vmatprep.subr.bf16.mxu1 %v780_v39 }
  0x5d   :  { %496 = vmatpush1.bf16.msra.mxu0 %v764_v36 }
  0x5e   :  { %497 = vmatprep.subr.bf16.mxu0 %v766_v37  ;;  %539 = vmatpush1.bf16.msra.mxu1 %v783_v43 }
  0x5f   :  { %540 = vmatprep.subr.bf16.mxu1 %v786_v44 }
  0x61   :  { %498 = vmatpush1.bf16.msra.mxu0 %v770_v40 }
  0x62   :  { %499 = vmatprep.subr.bf16.mxu0 %v772_v41  ;;  %541 = vmatpush1.bf16.msra.mxu1 %v789_v47 }
  0x63   :  { %542 = vmatprep.subr.bf16.mxu1 %v792_v48 }
  0x65   :  { %500 = vmatpush1.bf16.msra.mxu0 %v776_v45 }
  0x66   :  { %501 = vmatprep.subr.bf16.mxu0 %v778_v46  ;;  %543 = vmatpush1.bf16.msra.mxu1 %v795_v51  ;;  %v601_v46 = vld [vmem:[#allocation5] sm:$0xff] }
  0x67   :  { %544 = vmatprep.subr.bf16.mxu1 %v798_v52 }
  0x69   :  { %502 = vmatpush1.bf16.msra.mxu0 %v782_v49 }
  0x6a   :  { %503 = vmatprep.subr.bf16.mxu0 %v784_v50  ;;  %545 = vmatpush1.bf16.msra.mxu1 %v801_v55  ;;  %v602_v50 = vld [vmem:[#allocation5 + $0x8] sm:$0xff] }
  0x6b   :  { %546 = vmatprep.subr.bf16.mxu1 %v805_v56 }
  0x6d   :  { %504 = vmatpush1.bf16.msra.mxu0 %v788_v53 }
  0x6e   :  { %505 = vmatprep.subr.bf16.mxu0 %v790_v54  ;;  %547 = vmatpush1.bf16.msra.mxu1 %v807_v59 }
  0x6f   :  { %548 = vmatprep.subr.bf16.mxu1 %v808_v60 }
  0x71   :  { %506 = vmatpush1.bf16.msra.mxu0 %v794_v57 }
  0x72   :  { %507 = vmatprep.subr.bf16.mxu0 %v796_v58  ;;  %549 = vmatpush1.bf16.msra.mxu1 %v810_v62 }
  0x73   :  { %550 = vmatprep.subr.bf16.mxu1 %v811_v63 }
  0x75   :  { %508 = vmatpush1.bf16.msra.mxu0 %v800_v61 }
  0x76   :  { %551 = vmatpush1.bf16.msra.mxu1 %v813_v1 }
  0x78   :  { %510 = vmatmul.mubr.bf16.vlgmr.msra.gmra.mrb[0].mxu0 %v802_v0 }
  0x79   :  { %553 = vmatmul.mubr.bf16.vlgmr.msra.gmra.mrb[0].mxu1 %v802_v0 }
 0x14b   :  { %v511_v10 = vpop.f32.mrb[0].mxu0 }
 0x14c   :  { %v512_v11 = vadd.f32 %v511_v10, %v130_v7  ;;  %v513_v12 = vpop.f32.mrb[1].mxu0  ;;  %v554_v23 = vpop.f32.mrb[0].mxu1 }
 0x14d   :  { %v514_v13 = vadd.f32 %v513_v12, %v134_v8  ;;  %v515_v14 = vpop.f32.mrb[2].mxu0  ;;  %v556_v26 = vpop.f32.mrb[1].mxu1  ;;  %v555_v31 = vadd.f32 %v554_v23, %v138_v25 }
 0x14e   :  { %v701_v16 = vmul.f32 -1.442695, %v512_v11  ;;  %v516_v17 = vadd.f32 %v515_v14, %v130_v7  ;;  %v517_v18 = vpop.f32.mrb[3].mxu0  ;;  %v557_v27 = vadd.f32 %v556_v26, %v142_v19  ;;  %v558_v28 = vpop.f32.mrb[2].mxu1 }
 0x14f   :  { %v703_v20 = vmul.f32 -1.442695, %v514_v13  ;;  %v518_v21 = vadd.f32 %v517_v18, %v134_v8  ;;  %v560_v29 = vpop.f32.mrb[3].mxu1  ;;  %v559_v33 = vadd.f32 %v558_v28, %v138_v25 }
 0x150   :  { %814 = vpow2.f32 %v701_v16  ;;  %v702_v22 = vmul.f32 -1.442695, %v516_v17  ;;  %v561_v30 = vadd.f32 %v560_v29, %v142_v19  ;;  %v705_v32 = vmul.f32 -1.442695, %v557_v27 }
 0x151   :  { %816 = vpow2.f32 %v703_v20  ;;  %v704_v24 = vmul.f32 -1.442695, %v518_v21 }
 0x152   :  { %818 = vpow2.f32 %v702_v22  ;;  %v706_v34 = vmul.f32 -1.442695, %v561_v30 }
 0x153   :  { %820 = vpow2.f32 %v704_v24 }
 0x154   :  { %822 = vtanh.f32 %v555_v31 }
 0x155   :  { %824 = vpow2.f32 %v705_v32 }
 0x156   :  { %826 = vtanh.f32 %v559_v33 }
 0x157   :  { %828 = vpow2.f32 %v706_v34 }
 0x15a   :  { %v815_v35 = vpop.eup %814 }
 0x15b   :  { %v817_v36 = vpop.eup %816  ;;  %v569_v37 = vadd.f32 1.0, %v815_v35 }
 0x15c   :  { %v819_v38 = vpop.eup %818  ;;  %v581_v39 = vadd.f32 1.0, %v817_v36 }
 0x15d   :  { %v821_v40 = vpop.eup %820  ;;  %830 = vrcp.f32 %v569_v37  ;;  %v570_v41 = vadd.f32 1.0, %v819_v38 }
 0x15e   :  { %832 = vrcp.f32 %v581_v39  ;;  %v582_v42 = vadd.f32 1.0, %v821_v40  ;;  %v823_v43 = vpop.eup %822 }
 0x15f   :  { %834 = vrcp.f32 %v570_v41  ;;  %v825_v44 = vpop.eup %824 }
 0x160   :  { %836 = vrcp.f32 %v582_v42  ;;  %v827_v45 = vpop.eup %826  ;;  %v595_v49 = vadd.f32 1.0, %v825_v44 }
 0x161   :  { %v829_v47 = vpop.eup %828 }
 0x162   :  { %v596_v56 = vadd.f32 1.0, %v829_v47  ;;  %838 = vrcp.f32 %v595_v49 }
 0x167   :  { %v831_v48 = vpop.eup %830 }
 0x168   :  { %v833_v51 = vpop.eup %832  ;;  %v603_v52 = vmul.f32 %v831_v48, %v601_v46 }
 0x169   :  { %v835_v53 = vpop.eup %834  ;;  %v605_v54 = vmul.f32 %v833_v51, %v823_v43 }
 0x16a   :  { %v837_v55 = vpop.eup %836  ;;  %v604_v57 = vmul.f32 %v835_v53, %v602_v50 }
 0x16b   :  { %v606_v58 = vmul.f32 %v837_v55, %v827_v45  ;;  %v607_v59 = vadd.f32 %v605_v54, %v603_v52 }
 0x16c   :  { %v839_v61 = vpop.eup %838 }
 0x16d   :  { %v608_v60 = vadd.f32 %v606_v58, %v604_v57  ;;  %840 = vtanh.f32 %v607_v59  ;;  %615 = vst [vmem:[#allocation8 + $0x8] sm:$0xff] %v607_v59 }
 0x16e   :  { %842 = vrcp.f32 %v596_v56 }
 0x16f   :  { %844 = vtanh.f32 %v608_v60  ;;  %616 = vst [vmem:[#allocation8 + $0x18] sm:$0xff] %v608_v60 }
 0x177   :  { %v841_v62 = vpop.eup %840 }
 0x178   :  { %v843_v63 = vpop.eup %842  ;;  %v611_v0 = vmul.f32 %v841_v62, %v839_v61 }
 0x179   :  { %v845_v1 = vpop.eup %844 }
 0x17a   :  { %v612_v2 = vmul.f32 %v845_v1, %v843_v63  ;;  %613 = vst [vmem:[#allocation8] sm:$0xff] %v611_v0 }
 0x17c   :  { %614 = vst [vmem:[#allocation8 + $0x10] sm:$0xff] %v612_v2 }
 0x17d   :  { %923 = shalt.err (!%p920_p0)
}
 0x17e   :  { %s924_s6 = scalar_lea.hbm %s1041_s4, 512 }
 0x17f   :  { %p925_p1 = scmp.ne.s32.totalorder %s1041_s4, %s924_s6  ;;  %p928_p2 = scmp.lt.u32.totalorder %s924_s6, %s1041_s4 }
 0x181   :  { %p930_p3 = pnand %p928_p2, %p925_p1 }
 0x183   :  { %933 = shalt.err (!%p930_p3)
}
 0x184   :  { %628 = dma.vmem_to_hbm [thread:$0]  %s623_s28, 512, %s1041_s4, [#allocation4], %s945_s0, %s945_s0, %s946_s18  }
 0x185   :  { %938 = dma.done.wait [#allocation4], 512  }
 0x186   :  { %939 = vsyncadd [#allocation4], 4294966784 }
 0x187   :  { %632 = vsyncpa [#allocation3], 1 }
 0x188   :  { %633 = vsyncpa [#allocation6], 1 }
 0x189   :  { %634 = vsyncpa [#allocation4], 1 }

</bundles_post_ra>
